<compile_context>
chip_gen: v7x
topology: tpu7x:2x2x1
jax: 0.10.0
libtpu: 0.0.40
codegen_flags: <defaults>
</compile_context>

<pallas_src>
import jax
import jax.numpy as jnp
from jax.experimental import pallas as pl
from jax.experimental.pallas import tpu as pltpu


# ----------------------------- small helpers ---------------------------------

def _round_up(v, m):
    return ((v + m - 1) // m) * m


def _num_tensorcores():
    """Best-effort TensorCore count (2 on v7x, 1 on v5e/v6e). Safe fallback: 1."""
    try:
        info = pltpu.get_tpu_info()
        for name in ("num_cores", "core_count", "num_tensorcores",
                     "tensorcores_per_chip", "num_cores_per_chip"):
            v = getattr(info, name, None)
            if isinstance(v, int) and 1 <= v <= 8:
                return v
    except Exception:
        pass
    return 1


def _vmem_capacity_bytes():
    try:
        return int(pltpu.get_tpu_info().vmem_capacity_bytes)
    except Exception:
        return 64 * 1024 * 1024          # assume the smallest (v7x per-TC)


def _vmem_limit(working_set_bytes):
    """Working set + headroom; never request all of physical VMEM (v7x)."""
    cap = _vmem_capacity_bytes()
    want = working_set_bytes + working_set_bytes // 2 + (4 << 20)
    return int(min(max(want, 32 << 20), (cap * 3) // 4))


# --------------------- kernel A: 1x1 conv as matmul ---------------------------

def _make_matmul_kernel(*, single_k, has_prelu, has_residual, has_shortcut):
    """(M,K)@(K,N) + folded-BN shift (+ fused shortcut GEMM, f32 residual,
    PReLU)."""

    def epilogue(y, res_ref, alpha_ref, o_ref):
        if has_residual:
            y = y + res_ref[...].astype(jnp.float32)
        if has_prelu:
            a = alpha_ref[0]
            y = jnp.where(y >= 0, y, a * y)
        o_ref[...] = y.astype(o_ref.dtype)

    def kernel(*refs):
        it = iter(refs)
        x_ref = next(it)                                  # (bm, tk)  bf16
        w_ref = next(it)                                  # (tk, bn)  bf16 (BN folded)
        shift_ref = next(it)                              # (1, bn)   f32
        res_ref = next(it) if has_residual else None      # (bm, bn)  f32
        xs_ref = next(it) if has_shortcut else None       # (bm, Ksc) bf16
        wsc_ref = next(it) if has_shortcut else None      # (Ksc, bn) bf16 (BN folded)
        alpha_ref = next(it) if has_prelu else None       # (1,)      f32 SMEM
        o_ref = next(it)                                  # (bm, bn)

        if single_k:
            # No K grid axis: no scratch, no read-modify-write pass.
            y = jnp.dot(x_ref[...], w_ref[...],
                        preferred_element_type=jnp.float32) + shift_ref[...]
            if has_shortcut:
                y = y + jnp.dot(xs_ref[...], wsc_ref[...],
                                preferred_element_type=jnp.float32)
            epilogue(y, res_ref, alpha_ref, o_ref)
        else:
            acc_ref = next(it)                            # (bm, bn) f32 scratch
            k = pl.program_id(2)

            @pl.when(k == 0)
            def _init():
                # Shortcut GEMM + BN shift seed the accumulator at k == 0
                # (spreads MXU work, no zero-fill / epilogue shift pass).
                init = jnp.broadcast_to(shift_ref[...], acc_ref.shape)
                if has_shortcut:
                    init = init + jnp.dot(xs_ref[...], wsc_ref[...],
                                          preferred_element_type=jnp.float32)
                acc_ref[...] = init

            acc_ref[...] += jnp.dot(x_ref[...], w_ref[...],
                                    preferred_element_type=jnp.float32)

            @pl.when(k == pl.num_programs(2) - 1)
            def _finalize():
                epilogue(acc_ref[...], res_ref, alpha_ref, o_ref)

    return kernel


def matmul_bn_act(x, w, shift, *, alpha=None, residual=None, shortcut=None,
                  out_dtype=jnp.float32, block_m=1024, block_n=512):
    """Fused 1x1-conv-as-matmul + folded BN (+ fused shortcut GEMM / f32
    residual / PReLU).

    x:        (M, K)  bf16 activation rows (channels-last)
    w:        (K, N)  bf16, BN scale pre-folded into columns
    shift:    (N,)    f32 folded BN shift (already includes the shortcut BN
                      shift when `shortcut` is given)
    residual: (M, N)  f32 identity-shortcut rows, added before PReLU
    shortcut: (xs, wsc) with xs (M, Ksc) bf16 and wsc (Ksc, N) bf16 (folded)
    """
    M, K = x.shape
    N = w.shape[1]
    shift_f = shift.astype(jnp.float32).reshape(1, N)

    # ---- tile sizes ----
    bn = min(block_n, N)
    bm = min(block_m, M)
    # Only expose >= 2 parallel blocks when the chip actually has 2 TCs (v7x);
    # single-TC chips (v5e/v6e) keep the biggest tile.
    if _num_tensorcores() >= 2 and bm == M and bn == N and M >= 512:
        bm = min(M, _round_up(pl.cdiv(M, 2), 256))

    # K ("arbitrary") reduction axis only when a single block would be large;
    # prefer multiples of 256 to keep the 2x256^2 MXU (v6e/v7x) full.
    tk = K
    if K > 2048:
        for cand in (512, 256, 384, 128):
            if K % cand == 0:
                tk = cand
                break
        # TODO(synk): zero-pad K up to a multiple of 256 instead of the
        # tk == K fallback when K has no aligned divisor.
    nm, nn, nk = pl.cdiv(M, bm), pl.cdiv(N, bn), K // tk
    single_k = nk == 1

    if single_k:
        grid = (nm, nn)
        semantics = ("parallel", "parallel")
        x_map = lambda i, j: (i, 0)
        w_map = lambda i, j: (0, j)
        col_map = lambda i, j: (0, j)
        tile_map = lambda i, j: (i, j)
        scx_map = lambda i, j: (i, 0)
    else:
        grid = (nm, nn, nk)
        semantics = ("parallel", "parallel", "arbitrary")
        x_map = lambda i, j, k: (i, k)
        w_map = lambda i, j, k: (k, j)
        col_map = lambda i, j, k: (0, j)
        tile_map = lambda i, j, k: (i, j)
        scx_map = lambda i, j, k: (i, 0)

    in_specs = [pl.BlockSpec((bm, tk), x_map),
                pl.BlockSpec((tk, bn), w_map),
                pl.BlockSpec((1, bn), col_map)]
    inputs = [x.astype(jnp.bfloat16), w.astype(jnp.bfloat16), shift_f]

    out_bytes = jnp.dtype(out_dtype).itemsize
    flops = 2 * M * K * N
    bytes_accessed = (M * K + K * N) * 2 + N * 4 + M * N * out_bytes
    ws = 2 * (bm * tk + tk * bn) * 2 + 2 * bm * bn * out_bytes + bn * 8
    if not single_k:
        ws += bm * bn * 4

    if residual is not None:
        in_specs.append(pl.BlockSpec((bm, bn), tile_map))
        inputs.append(residual.astype(jnp.float32))
        bytes_accessed += M * N * 4
        ws += 2 * bm * bn * 4
    if shortcut is not None:
        xs, wsc = shortcut
        ksc = xs.shape[1]
        in_specs += [pl.BlockSpec((bm, ksc), scx_map),
                     pl.BlockSpec((ksc, bn), col_map)]
        inputs += [xs.astype(jnp.bfloat16), wsc.astype(jnp.bfloat16)]
        flops += 2 * M * ksc * N
        bytes_accessed += (M * ksc + ksc * N) * 2
        ws += 2 * (bm * ksc + ksc * bn) * 2
    if alpha is not None:
        in_specs.append(pl.BlockSpec(memory_space=pltpu.MemorySpace.SMEM))
        inputs.append(jnp.asarray(alpha, jnp.float32).reshape(1,))

    kernel = _make_matmul_kernel(single_k=single_k,
                                 has_prelu=alpha is not None,
                                 has_residual=residual is not None,
                                 has_shortcut=shortcut is not None)

    return pl.pallas_call(
        kernel,
        out_shape=jax.ShapeDtypeStruct((M, N), out_dtype),
        grid=grid,
        in_specs=in_specs,
        out_specs=pl.BlockSpec((bm, bn), tile_map),
        scratch_shapes=[] if single_k else [pltpu.VMEM((bm, bn), jnp.float32)],
        compiler_params=pltpu.CompilerParams(
            dimension_semantics=semantics,
            vmem_limit_bytes=_vmem_limit(ws)),
        cost_estimate=pl.CostEstimate(flops=flops, transcendentals=0,
                                      bytes_accessed=bytes_accessed),
    )(*inputs)


# ------------------- kernel B: fused 3x3 conv (no im2col) ---------------------

def _make_conv3x3_kernel(*, stride, th, Wo, C, Cout):
    """9-tap 3x3 conv over one output row-block, shifted-window reads from the
    padded NHWC activation resident in VMEM; f32 accumulation; BN shift seeds
    the accumulator; PReLU epilogue."""

    def kernel(*refs):
        it = iter(refs)
        phase_refs = [next(it) for _ in range(stride * stride)]  # (Hph,Wph,C) bf16
        w_ref = next(it)                  # (9, C, Cout) bf16 (BN folded)
        shift_ref = next(it)              # (1, Cout)    f32
        alpha_ref = next(it)              # (1,)         f32 SMEM
        o_ref = next(it)                  # (th, Wo, Cout)
        acc_ref = next(it)                # (th*Wo, Cout) f32

        r0 = pl.program_id(1) * th
        if th % 8 == 0:
            r0 = pl.multiple_of(r0, 8)

        # Seed the accumulator with the folded-BN shift (no zero-fill pass).
        acc_ref[...] = jnp.broadcast_to(shift_ref[...], acc_ref.shape)

        for dh in range(3):
            for dw in range(3):
                if stride == 1:
                    xr, row0, col0 = phase_refs[0], r0 + dh, dw
                else:  # stride == 2: tap (dh, dw) lives in phase (dh%2, dw%2)
                    xr = phase_refs[(dh % 2) * 2 + (dw % 2)]
                    row0, col0 = r0 + dh // 2, dw // 2
                win = xr[pl.ds(row0, th), pl.ds(col0, Wo), :]
                acc_ref[...] += jnp.dot(win.reshape(th * Wo, C),
                                        w_ref[3 * dh + dw],
                                        preferred_element_type=jnp.float32)

        y = acc_ref[...]
        a = alpha_ref[0]
        y = jnp.where(y >= 0, y, a * y)
        o_ref[...] = y.reshape(th, Wo, Cout).astype(o_ref.dtype)

    return kernel


def conv3x3_bn_act(x_nhwc, w9, shift, alpha, stride, *, out_dtype=jnp.bfloat16,
                   acc_budget_bytes=2 << 20):
    """Fused 3x3 conv (pad=1, stride in {1,2}) + folded BN + PReLU.

    The 9-tap im2col is NOT materialized in HBM: the kernel reads shifted
    windows of the padded NHWC activation directly from VMEM.  For stride=2
    the padded activation is pre-split into its 2x2 spatial phases (one small
    ~1x HBM pass) so every in-kernel window load is contiguous.
    """
    assert stride in (1, 2), "BottleneckBlock only uses stride 1 or 2"
    Nb, H, W, C = x_nhwc.shape
    Cout = w9.shape[-1]
    Ho = (H - 1) // stride + 1
    Wo = (W - 1) // stride + 1

    # TODO(synk): the zero-pad (and phase split) is still one small JAX-side
    # copy; it could be removed by writing the feature_mixing output directly
    # into a padded buffer.
    xp = jnp.pad(x_nhwc.astype(jnp.bfloat16), ((0, 0), (1, 1), (1, 1), (0, 0)))
    if stride == 1:
        phases = [xp]
    else:
        Hp, Wp = H + 2, W + 2
        xp = jnp.pad(xp, ((0, 0), (0, Hp % 2), (0, Wp % 2), (0, 0)))
        phases = [xp[:, a::2, b::2, :] for a in range(2) for b in range(2)]
    Hph, Wph = phases[0].shape[1], phases[0].shape[2]

    # Output-row block: largest divisor of Ho whose f32 accumulator fits budget.
    per_row = Wo * Cout * 4
    th = Ho
    if th * per_row > acc_budget_bytes:
        th = 1
        for cand in range(min(Ho, max(1, acc_budget_bytes // per_row)), 0, -1):
            if Ho % cand == 0:
                th = cand
                break
    n_rb = Ho // th

    kernel = _make_conv3x3_kernel(stride=stride, th=th, Wo=Wo, C=C, Cout=Cout)

    phase_spec = pl.BlockSpec((None, Hph, Wph, C), lambda n, r: (n, 0, 0, 0))
    in_specs = [phase_spec] * len(phases) + [
        pl.BlockSpec((9, C, Cout), lambda n, r: (0, 0, 0)),
        pl.BlockSpec((1, Cout), lambda n, r: (0, 0)),
        pl.BlockSpec(memory_space=pltpu.MemorySpace.SMEM),
    ]
    out_spec = pl.BlockSpec((None, th, Wo, Cout), lambda n, r: (n, r, 0, 0))

    out_bytes = jnp.dtype(out_dtype).itemsize
    flops = 2 * Nb * Ho * Wo * 9 * C * Cout
    bytes_accessed = (sum(int(p.size) for p in phases) * 2 + 9 * C * Cout * 2
                      + Cout * 4 + Nb * Ho * Wo * Cout * out_bytes)
    ws = (len(phases) * 2 * Hph * Wph * C * 2 + 2 * 9 * C * Cout * 2
          + 2 * th * Wo * Cout * out_bytes + th * Wo * Cout * 4 + Cout * 8)

    return pl.pallas_call(
        kernel,
        out_shape=jax.ShapeDtypeStruct((Nb, Ho, Wo, Cout), out_dtype),
        grid=(Nb, n_rb),
        in_specs=in_specs,
        out_specs=out_spec,
        scratch_shapes=[pltpu.VMEM((th * Wo, Cout), jnp.float32)],
        compiler_params=pltpu.CompilerParams(
            dimension_semantics=("parallel", "parallel"),
            vmem_limit_bytes=_vmem_limit(ws)),
        cost_estimate=pl.CostEstimate(flops=flops, transcendentals=0,
                                      bytes_accessed=bytes_accessed),
    )(*phases, w9, shift.astype(jnp.float32).reshape(1, Cout),
      jnp.asarray(alpha, jnp.float32).reshape(1,))


# ------------------------------- block forward --------------------------------

def bottleneck_block_forward(x_nchw, p, stride):
    """Pallas implementation of BottleneckBlock.forward (eval-mode BN).

    TODO(synk): the NCHW<->NHWC transposes at the block boundary are kept only
    for PyTorch parity; keeping the whole network NHWC would drop two full
    activation HBM round trips per block.
    """
    x = jnp.transpose(x_nchw, (0, 2, 3, 1))        # NCHW -> NHWC
    Nb, H, W, Cin = x.shape
    hidden = p["fm_w"].shape[1]
    Cout = p["bc_w"].shape[1]

    x_rows = x.reshape(Nb * H * W, Cin)

    # feature_mixing: 1x1 conv -> BN -> PReLU   (bf16 intermediate)
    h1 = matmul_bn_act(x_rows.astype(jnp.bfloat16), p["fm_w"], p["fm_shift"],
                       alpha=p["fm_alpha"], out_dtype=jnp.bfloat16)
    h1 = h1.reshape(Nb, H, W, hidden)

    # spatial_mixing: fused 3x3 conv (stride) -> BN -> PReLU (no im2col in HBM)
    h2 = conv3x3_bn_act(h1, p["sm_w9"], p["sm_shift"], p["sm_alpha"], stride,
                        out_dtype=jnp.bfloat16)
    Ho, Wo = h2.shape[1], h2.shape[2]
    h2_rows = h2.reshape(Nb * Ho * Wo, hidden)

    # bottleneck_channels (1x1 conv -> BN) + stochastic_depth(p=0.0, identity)
    # + shortcut (f32 identity residual OR fused strided 1x1 conv -> BN)
    # + final PReLU, all in one kernel.
    if p["sc_w"] is None:
        out = matmul_bn_act(h2_rows, p["bc_w"], p["bc_shift"],
                            alpha=p["act_alpha"], residual=x_rows,
                            out_dtype=jnp.float32)
    else:
        xs = x[:, ::stride, ::stride, :].reshape(Nb * Ho * Wo, Cin)
        out = matmul_bn_act(h2_rows, p["bc_w"], p["bc_shift_total"],
                            alpha=p["act_alpha"],
                            shortcut=(xs.astype(jnp.bfloat16), p["sc_w"]),
                            out_dtype=jnp.float32)
    out = out.reshape(Nb, Ho, Wo, Cout)
    return jnp.transpose(out, (0, 3, 1, 2))         # NHWC -> NCHW


# -------------------------- parameters & reference ----------------------------

def _bn_fold(keys, c, eps=1e-5):
    kg, kb, km, kv = keys
    gamma = jax.random.uniform(kg, (c,), minval=0.8, maxval=1.2)
    beta = 0.1 * jax.random.normal(kb, (c,))
    mean = 0.1 * jax.random.normal(km, (c,))
    var = jax.random.uniform(kv, (c,), minval=0.5, maxval=1.5)
    scale = gamma / jnp.sqrt(var + eps)
    shift = beta - mean * scale
    return scale, shift


def make_params(key, cin, hidden, cout, stride):
    """Random module parameters.  BN scale is folded into the bf16 kernel
    weights ONCE here (parameter-load time), not per forward call."""
    ks = jax.random.split(key, 20)
    p = {}

    fm_w = 0.1 * jax.random.normal(ks[0], (hidden, cin, 1, 1))
    fm_scale, fm_shift = _bn_fold(ks[1:5], hidden)
    p["fm_w_oihw"], p["fm_scale"] = fm_w, fm_scale
    p["fm_w"] = (fm_w.reshape(hidden, cin).T * fm_scale[None, :]).astype(jnp.bfloat16)
    p["fm_shift"] = fm_shift.astype(jnp.float32)
    p["fm_alpha"] = jnp.float32(0.25)                 # PReLU default

    sm_w = 0.1 * jax.random.normal(ks[5], (hidden, hidden, 3, 3))
    sm_scale, sm_shift = _bn_fold(ks[6:10], hidden)
    p["sm_w_oihw"], p["sm_scale"] = sm_w, sm_scale
    w9 = jnp.transpose(sm_w, (2, 3, 1, 0)).reshape(9, hidden, hidden)
    p["sm_w9"] = (w9 * sm_scale[None, None, :]).astype(jnp.bfloat16)
    p["sm_shift"] = sm_shift.astype(jnp.float32)
    p["sm_alpha"] = jnp.float32(0.25)

    bc_w = 0.1 * jax.random.normal(ks[10], (cout, hidden, 1, 1))
    bc_scale, bc_shift = _bn_fold(ks[11:15], cout)
    p["bc_w_oihw"], p["bc_scale"] = bc_w, bc_scale
    p["bc_w"] = (bc_w.reshape(cout, hidden).T * bc_scale[None, :]).astype(jnp.bfloat16)
    p["bc_shift"] = bc_shift.astype(jnp.float32)

    if stride == 1 and cin == cout:
        p["sc_w_oihw"] = None
        p["sc_w"] = None
    else:
        sc_w = 0.1 * jax.random.normal(ks[15], (cout, cin, 1, 1))
        sc_scale, sc_shift = _bn_fold(ks[16:20], cout)
        p["sc_w_oihw"], p["sc_scale"], p["sc_shift"] = sc_w, sc_scale, sc_shift
        p["sc_w"] = (sc_w.reshape(cout, cin).T * sc_scale[None, :]).astype(jnp.bfloat16)
        # Both BN shifts enter the same epilogue add -> pre-sum them.
        p["bc_shift_total"] = (bc_shift + sc_shift).astype(jnp.float32)

    p["act_alpha"] = jnp.float32(0.25)
    return p


def reference_forward(x_nchw, p, stride):
    """Pure-JAX f32 reference (lax conv) with the same folded-BN parameters."""
    def conv(x, w, s, pad):
        return jax.lax.conv_general_dilated(
            x, w, (s, s), ((pad, pad), (pad, pad)),
            dimension_numbers=("NCHW", "OIHW", "NCHW"))

    def bn(y, scale, shift):
        return y * scale[None, :, None, None] + shift[None, :, None, None]

    def prelu(y, a):
        return jnp.where(y >= 0, y, a * y)

    out = prelu(bn(conv(x_nchw, p["fm_w_oihw"], 1, 0),
                   p["fm_scale"], p["fm_shift"]), p["fm_alpha"])
    out = prelu(bn(conv(out, p["sm_w_oihw"], stride, 1),
                   p["sm_scale"], p["sm_shift"]), p["sm_alpha"])
    out = bn(conv(out, p["bc_w_oihw"], 1, 0), p["bc_scale"], p["bc_shift"])
    if p["sc_w_oihw"] is None:
        sc = x_nchw
    else:
        sc = bn(conv(x_nchw, p["sc_w_oihw"], stride, 0),
                p["sc_scale"], p["sc_shift"])
    # StochasticDepth(p=0.0, mode='batch') is the identity.
    return prelu(out + sc, p["act_alpha"])


# ----------------------------------- main --------------------------------------

if __name__ == "__main__":
    key = jax.random.PRNGKey(0)

    # Case 1: strided block with conv shortcut (fused-shortcut GEMM path,
    # stride-2 phase-split 3x3 kernel).
    batch, cin, hidden, cout, spatial, stride = 2, 4, 8, 8, 16, 2
    kx, kp, kx2, kp2 = jax.random.split(key, 4)
    x = jax.random.normal(kx, (batch, cin, spatial, spatial), dtype=jnp.float32)
    params = make_params(kp, cin, hidden, cout, stride)

    out = jax.block_until_ready(bottleneck_block_forward(x, params, stride))
    ref = jax.block_until_ready(reference_forward(x, params, stride))
    assert out.shape == ref.shape
    max_err = float(jnp.max(jnp.abs(out - ref)))
    # bf16 matmul operands (f32 accumulation) -> loosened tolerance vs f32 ref.
    assert max_err < 5e-2, f"mismatch vs reference (strided): {max_err}"

    # Case 2: identity shortcut (stride=1, cin==cout) -> f32 residual path,
    # stride-1 fused 3x3 kernel.
    x2 = jax.random.normal(kx2, (batch, cout, spatial, spatial),
                           dtype=jnp.float32)
    params2 = make_params(kp2, cout, hidden, cout, 1)
    out2 = jax.block_until_ready(bottleneck_block_forward(x2, params2, 1))
    ref2 = jax.block_until_ready(reference_forward(x2, params2, 1))
    assert out2.shape == ref2.shape
    max_err2 = float(jnp.max(jnp.abs(out2 - ref2)))
    assert max_err2 < 5e-2, f"mismatch vs reference (identity): {max_err2}"

    print("KERNEL_OK")
</pallas_src>

<mosaic_0001>
module attributes {stable_mosaic.version = 11 : i64} {
  func.func @kernel(%arg0: i32, %arg1: i32, %arg2: memref<512x4xbf16, #tpu.memory_space<vmem>>, %arg3: memref<4x8xbf16, #tpu.memory_space<vmem>>, %arg4: memref<1x8xf32, #tpu.memory_space<vmem>>, %arg5: memref<1xf32, #tpu.memory_space<smem>>, %arg6: memref<512x8xbf16, #tpu.memory_space<vmem>>) attributes {dimension_semantics = [#tpu.dimension_semantics<parallel>, #tpu.dimension_semantics<parallel>], iteration_bounds = array<i64: 1, 1>, scalar_prefetch = 0 : i64, scratch_operands = 0 : i64, tpu.core_type = #tpu.core_type<tc>, window_params = [{transform_indices = @transform_0, window_bounds = array<i64: 512, 4>}, {transform_indices = @transform_1, window_bounds = array<i64: 4, 8>}, {transform_indices = @transform_2, window_bounds = array<i64: 1, 8>}, {transform_indices = @transform_3, window_bounds = array<i64: 1>}, {transform_indices = @transform_4, window_bounds = array<i64: 512, 8>}]} {
    %c0 = arith.constant 0 : index
    %c0_0 = arith.constant 0 : index
    %0 = vector.load %arg2[%c0, %c0_0] : memref<512x4xbf16, #tpu.memory_space<vmem>>, vector<512x4xbf16>
    %c0_1 = arith.constant 0 : index
    %c0_2 = arith.constant 0 : index
    %1 = vector.load %arg3[%c0_1, %c0_2] : memref<4x8xbf16, #tpu.memory_space<vmem>>, vector<4x8xbf16>
    %cst = arith.constant dense<0.000000e+00> : vector<512x8xf32>
    %2 = tpu.matmul %0, %1, %cst {dimension_numbers = #tpu.dot_dimension_numbers<[1], [0], [0], [1], [0, 0, 1, 1], [], []>} : vector<512x4xbf16>, vector<4x8xbf16>, vector<512x8xf32> -> vector<512x8xf32>
    %c0_3 = arith.constant 0 : index
    %c0_4 = arith.constant 0 : index
    %3 = vector.load %arg4[%c0_3, %c0_4] : memref<1x8xf32, #tpu.memory_space<vmem>>, vector<1x8xf32>
    %4 = vector.broadcast %3 : vector<1x8xf32> to vector<512x8xf32>
    %5 = arith.addf %2, %4 : vector<512x8xf32>
    %c0_5 = arith.constant 0 : index
    %6 = memref.load %arg5[%c0_5] : memref<1xf32, #tpu.memory_space<smem>>
    %cst_6 = arith.constant 0.000000e+00 : f32
    %7 = vector.broadcast %cst_6 : f32 to vector<512x8xf32>
    %8 = arith.cmpf oge, %5, %7 : vector<512x8xf32>
    %9 = vector.broadcast %6 : f32 to vector<512x8xf32>
    %10 = arith.mulf %9, %5 : vector<512x8xf32>
    %11 = arith.select %8, %5, %10 : vector<512x8xi1>, vector<512x8xf32>
    %12 = arith.truncf %11 : vector<512x8xf32> to vector<512x8xbf16>
    %c0_7 = arith.constant 0 : index
    %c0_8 = arith.constant 0 : index
    %13 = vector.load %arg6[%c0_7, %c0_8] : memref<512x8xbf16, #tpu.memory_space<vmem>>, vector<512x8xbf16>
    tpu.vector_store %arg6[%c0_7, %c0_8], %12 {strides = array<i32>} : memref<512x8xbf16, #tpu.memory_space<vmem>>, vector<512x8xbf16>,
    return
  }
  func.func @transform_0(%arg0: i32, %arg1: i32) -> (i32, i32) {
    %c0_i32 = arith.constant 0 : i32
    %c0_i32_0 = arith.constant 0 : i32
    return %arg0, %c0_i32 : i32, i32
  }
  func.func @transform_1(%arg0: i32, %arg1: i32) -> (i32, i32) {
    %c0_i32 = arith.constant 0 : i32
    %c0_i32_0 = arith.constant 0 : i32
    return %c0_i32, %arg1 : i32, i32
  }
  func.func @transform_2(%arg0: i32, %arg1: i32) -> (i32, i32) {
    %c0_i32 = arith.constant 0 : i32
    %c0_i32_0 = arith.constant 0 : i32
    return %c0_i32, %arg1 : i32, i32
  }
  func.func @transform_3(%arg0: i32, %arg1: i32) -> i32 {
    %c0_i32 = arith.constant 0 : i32
    %c0_i32_0 = arith.constant 0 : i32
    return %c0_i32 : i32
  }
  func.func @transform_4(%arg0: i32, %arg1: i32) -> (i32, i32) {
    %c0_i32 = arith.constant 0 : i32
    return %arg0, %arg1 : i32, i32
  }
}

</mosaic_0001>

<bundles_post_ra>
// kernel: tpu_custom_call.1
= control target key start
LH: loop header
LB: loop body
LE: loop exit
PB: predicated region body
PF: predicated region fallthrough
CT: control target
= control target key end

     0   :  { %vm348_vm0 = vcmask 1041408   ;;  %vm251_vm1 = vcmask 31744   ;;  %vm1091_vm2 = vcmask 60416   ;;  %s2108_s1 = inlined_call_operand.vmem [shape: bf16[4,8], index: 1, kind: input, shape index: {}]   ;;  %s2109_s0 = inlined_call_operand.vmem [shape: bf16[512,4], index: 0, kind: input, shape index: {}]   ;;  %s2110_s2 = inlined_call_operand.vmem [shape: f32[1,8], index: 2, kind: input, shape index: {}]   ;;  %s2111_s3 = inlined_call_operand.<no memory space> [shape: f32[1], index: 3, kind: input, shape index: {}]   ;;  %s2112_s4 = inlined_call_operand.vmem [shape: bf16[512,8], index: 4, kind: output, shape index: {}]  }
   0x1   :  { %v83_v0 = vld [vmem:[%s2108_s1] sm:$0x3]  ;;  %v1458_v4 = vld [vmem:[%s2109_s0 + $0x8] sm:$0xff]   ;;  %v1460_v6 = vld [vmem:[%s2109_s0 + $0x10] sm:$0xff]   ;;  %v1652_v36 = vstv %s2111_s3 }
   0x2   :  { %1454 = vmatprep.subr.msk.bf16.mxu0 %vm348_vm0, %v83_v0  ;;  %1455 = vmatprep.subr.msk.bf16.mxu1 %vm348_vm0, %v83_v0  ;;  %v350_v1 = vsel %vm348_vm0, %v83_v0, 0  ;;  %v1456_v2 = vld [vmem:[%s2109_s0] sm:$0xff]   ;;  %v1459_v5 = vld [vmem:[%s2109_s0 + $0x88] sm:$0xff]   ;;  %v1461_v7 = vld [vmem:[%s2109_s0 + $0x90] sm:$0xff]  }
   0x3   :  { %1387 = vmatpush3.bf16.msra.mxu0 %v350_v1  ;;  %1453 = vmatpush3.bf16.msra.mxu1 %v350_v1  ;;  %v1457_v3 = vld [vmem:[%s2109_s0 + $0x80] sm:$0xff]   ;;  %v1462_v8 = vld [vmem:[%s2109_s0 + $0x18] sm:$0xff]   ;;  %v1466_v12 = vld [vmem:[%s2109_s0 + $0x28] sm:$0xff]  }
   0x4   :  { %1388 = vmatprep.mubr.msk.bf16.mxu0 %vm251_vm1, %v1456_v2  ;;  %1420 = vmatprep.mubr.msk.bf16.mxu1 %vm251_vm1, %v1457_v3  ;;  %v1463_v9 = vld [vmem:[%s2109_s0 + $0x98] sm:$0xff]   ;;  %v1464_v10 = vld [vmem:[%s2109_s0 + $0x20] sm:$0xff]   ;;  %v1467_v13 = vld [vmem:[%s2109_s0 + $0xa8] sm:$0xff]  }
   0x5   :  { %v1465_v11 = vld [vmem:[%s2109_s0 + $0xa0] sm:$0xff]   ;;  %v1468_v14 = vld [vmem:[%s2109_s0 + $0x30] sm:$0xff]   ;;  %v1470_v16 = vld [vmem:[%s2109_s0 + $0x38] sm:$0xff]  }
   0x6   :  { %1389 = vmatmul.mubr.msk.bf16.vlgmr.msra.gmra.mrb[0].mxu0 %vm251_vm1, %v1458_v4  ;;  %1421 = vmatmul.mubr.msk.bf16.vlgmr.msra.gmra.mrb[0].mxu1 %vm251_vm1, %v1459_v5  ;;  %v1469_v15 = vld [vmem:[%s2109_s0 + $0xb0] sm:$0xff]   ;;  %v1471_v17 = vld [vmem:[%s2109_s0 + $0xb8] sm:$0xff]   ;;  %v1472_v18 = vld [vmem:[%s2109_s0 + $0x40] sm:$0xff]  }
   0x7   :  { %1392 = vmatprep.mubr.msk.bf16.mxu0 %vm251_vm1, %v1460_v6  ;;  %1424 = vmatprep.mubr.msk.bf16.mxu1 %vm251_vm1, %v1461_v7  ;;  %v1473_v19 = vld [vmem:[%s2109_s0 + $0xc0] sm:$0xff]   ;;  %v1474_v20 = vld [vmem:[%s2109_s0 + $0x48] sm:$0xff]   ;;  %v1476_v22 = vld [vmem:[%s2109_s0 + $0x50] sm:$0xff]  }
   0x8   :  { %v1475_v21 = vld [vmem:[%s2109_s0 + $0xc8] sm:$0xff]   ;;  %v1477_v23 = vld [vmem:[%s2109_s0 + $0xd0] sm:$0xff]   ;;  %v1478_v24 = vld [vmem:[%s2109_s0 + $0x58] sm:$0xff]  }
   0x9   :  { %v1479_v25 = vld [vmem:[%s2109_s0 + $0xd8] sm:$0xff]   ;;  %v1480_v26 = vld [vmem:[%s2109_s0 + $0x60] sm:$0xff]   ;;  %v1482_v28 = vld [vmem:[%s2109_s0 + $0x68] sm:$0xff]  }
   0xa   :  { %v1481_v27 = vld [vmem:[%s2109_s0 + $0xe0] sm:$0xff]   ;;  %v1483_v29 = vld [vmem:[%s2109_s0 + $0xe8] sm:$0xff]   ;;  %v1484_v30 = vld [vmem:[%s2109_s0 + $0x70] sm:$0xff]  }
   0xb   :  { %v1485_v31 = vld [vmem:[%s2109_s0 + $0xf0] sm:$0xff]   ;;  %v1486_v32 = vld [vmem:[%s2109_s0 + $0x78] sm:$0xff]   ;;  %v1647_v34 = vld [vmem:[%s2110_s2] ss:$0 sm:$0xff] }
   0xc   :  { %v1487_v33 = vld [vmem:[%s2109_s0 + $0xf8] sm:$0xff]  }
   0xe   :  { %1393 = vmatmul.mubr.msk.bf16.gmra.mrb[4].mxu0 %vm251_vm1, %v1462_v8  ;;  %1425 = vmatmul.mubr.msk.bf16.gmra.mrb[4].mxu1 %vm251_vm1, %v1463_v9 }
   0xf   :  { %1396 = vmatprep.mubr.msk.bf16.mxu0 %vm251_vm1, %v1464_v10  ;;  %1428 = vmatprep.mubr.msk.bf16.mxu1 %vm251_vm1, %v1465_v11 }
  0x16   :  { %1397 = vmatmul.mubr.msk.bf16.gmra.mrb[8].mxu0 %vm251_vm1, %v1466_v12  ;;  %1429 = vmatmul.mubr.msk.bf16.gmra.mrb[8].mxu1 %vm251_vm1, %v1467_v13 }
  0x17   :  { %1400 = vmatprep.mubr.msk.bf16.mxu0 %vm251_vm1, %v1468_v14  ;;  %1432 = vmatprep.mubr.msk.bf16.mxu1 %vm251_vm1, %v1469_v15 }
  0x1e   :  { %1401 = vmatmul.mubr.msk.bf16.gmra.mrb[12].mxu0 %vm251_vm1, %v1470_v16  ;;  %1433 = vmatmul.mubr.msk.bf16.gmra.mrb[12].mxu1 %vm251_vm1, %v1471_v17 }
  0x1f   :  { %1404 = vmatprep.mubr.msk.bf16.mxu0 %vm251_vm1, %v1472_v18  ;;  %1436 = vmatprep.mubr.msk.bf16.mxu1 %vm251_vm1, %v1473_v19 }
  0x26   :  { %1405 = vmatmul.mubr.msk.bf16.gmra.mrb[16].mxu0 %vm251_vm1, %v1474_v20  ;;  %1437 = vmatmul.mubr.msk.bf16.gmra.mrb[16].mxu1 %vm251_vm1, %v1475_v21 }
  0x27   :  { %1408 = vmatprep.mubr.msk.bf16.mxu0 %vm251_vm1, %v1476_v22  ;;  %1440 = vmatprep.mubr.msk.bf16.mxu1 %vm251_vm1, %v1477_v23 }
  0x2e   :  { %1409 = vmatmul.mubr.msk.bf16.gmra.mrb[20].mxu0 %vm251_vm1, %v1478_v24  ;;  %1441 = vmatmul.mubr.msk.bf16.gmra.mrb[20].mxu1 %vm251_vm1, %v1479_v25 }
  0x2f   :  { %1412 = vmatprep.mubr.msk.bf16.mxu0 %vm251_vm1, %v1480_v26  ;;  %1444 = vmatprep.mubr.msk.bf16.mxu1 %vm251_vm1, %v1481_v27 }
  0x36   :  { %1413 = vmatmul.mubr.msk.bf16.gmra.mrb[24].mxu0 %vm251_vm1, %v1482_v28  ;;  %1445 = vmatmul.mubr.msk.bf16.gmra.mrb[24].mxu1 %vm251_vm1, %v1483_v29 }
  0x37   :  { %1416 = vmatprep.mubr.msk.bf16.mxu0 %vm251_vm1, %v1484_v30  ;;  %1448 = vmatprep.mubr.msk.bf16.mxu1 %vm251_vm1, %v1485_v31 }
  0x3e   :  { %1417 = vmatmul.mubr.msk.bf16.gmra.mrb[28].mxu0 %vm251_vm1, %v1486_v32  ;;  %1449 = vmatmul.mubr.msk.bf16.gmra.mrb[28].mxu1 %vm251_vm1, %v1487_v33 }
  0xd9   :  { %v1390_v35 = vpop.f32.mrb[0].mxu0  ;;  %v1422_v38 = vpop.f32.mrb[0].mxu1 }
  0xda   :  { %v395_v37 = vadd.f32 %v1390_v35, %v1647_v34  ;;  %v386_v39 = vpop.f32.mrb[1].mxu0  ;;  %v523_v40 = vadd.f32 %v1422_v38, %v1647_v34  ;;  %v514_v42 = vpop.f32.mrb[1].mxu1 }
  0xdb   :  { %v387_v41 = vadd.f32 %v1647_v34, %v386_v39  ;;  %v1391_v43 = vpop.f32.mrb[2].mxu0  ;;  %v515_v45 = vadd.f32 %v1647_v34, %v514_v42  ;;  %v1423_v47 = vpop.f32.mrb[2].mxu1 }
  0xdc   :  { %vm644_vm3 = vcmp.ge.f32.partialorder %v395_v37, 0.0  ;;  %v709_v44 = vmul.f32 %v1652_v36, %v395_v37  ;;  %v398_v46 = vadd.f32 %v1391_v43, %v1647_v34  ;;  %v389_v48 = vpop.f32.mrb[3].mxu0  ;;  %vm676_vm4 = vcmp.ge.f32.partialorder %v523_v40, 0.0  ;;  %v517_v51 = vpop.f32.mrb[3].mxu1 }
  0xdd   :  { %v741_v49 = vmul.f32 %v1652_v36, %v523_v40  ;;  %vm642_vm5 = vcmp.ge.f32.partialorder %v387_v41, 0.0  ;;  %v707_v50 = vmul.f32 %v1652_v36, %v387_v41  ;;  %vm674_vm6 = vcmp.ge.f32.partialorder %v515_v45, 0.0 }
  0xde   :  { %v773_v52 = vsel %vm644_vm3, %v395_v37, %v709_v44  ;;  %v739_v53 = vmul.f32 %v1652_v36, %v515_v45  ;;  %vm645_vm7 = vcmp.ge.f32.partialorder %v398_v46, 0.0  ;;  %v710_v57 = vmul.f32 %v1652_v36, %v398_v46 }
  0xdf   :  { %v1291_v54 = vpack.c.bf16 %v773_v52, %v773_v52  ;;  %v805_v55 = vsel %vm676_vm4, %v523_v40, %v741_v49  ;;  %v771_v56 = vsel %vm642_vm5, %v387_v41, %v707_v50  ;;  %v526_v61 = vadd.f32 %v1423_v47, %v1647_v34 }
  0xe0   :  { %v1323_v58 = vpack.c.bf16 %v805_v55, %v805_v55  ;;  %v1289_v59 = vpack.c.bf16 %v771_v56, %v771_v56  ;;  %v803_v60 = vsel %vm674_vm6, %v515_v45, %v739_v53  ;;  %v774_v63 = vsel %vm645_vm7, %v398_v46, %v710_v57 }
  0xe1   :  { %1094 = vst.msk [vmem:[%s2112_s4 + $0x8] sm:$0xf] %vm1091_vm2, %v1291_v54  ;;  %v1321_v62 = vpack.c.bf16 %v803_v60, %v803_v60  ;;  %v390_v0 = vadd.f32 %v1647_v34, %v389_v48  ;;  %v518_v1 = vadd.f32 %v1647_v34, %v517_v51  ;;  %v1394_v2 = vpop.f32.mrb[4].mxu0  ;;  %v1292_v3 = vpack.c.bf16 %v774_v63, %v774_v63  ;;  %v1426_v6 = vpop.f32.mrb[4].mxu1 }
  0xe2   :  { %1126 = vst.msk [vmem:[%s2112_s4 + $0x88] sm:$0xf] %vm1091_vm2, %v1323_v58  ;;  %1092 = vst.msk [vmem:[%s2112_s4] sm:$0xf] %vm1091_vm2, %v1289_v59  ;;  %vm677_vm8 = vcmp.ge.f32.partialorder %v526_v61, 0.0  ;;  %v742_v4 = vmul.f32 %v1652_v36, %v526_v61  ;;  %v411_v5 = vadd.f32 %v1394_v2, %v1647_v34  ;;  %v402_v7 = vpop.f32.mrb[5].mxu0  ;;  %v539_v14 = vadd.f32 %v1426_v6, %v1647_v34 }
  0xe3   :  { %1124 = vst.msk [vmem:[%s2112_s4 + $0x80] sm:$0xf] %vm1091_vm2, %v1321_v62  ;;  %vm643_vm9 = vcmp.ge.f32.partialorder %v390_v0, 0.0  ;;  %v708_v8 = vmul.f32 %v1652_v36, %v390_v0  ;;  %vm675_vm10 = vcmp.ge.f32.partialorder %v518_v1, 0.0  ;;  %v740_v9 = vmul.f32 %v1652_v36, %v518_v1  ;;  %v530_v10 = vpop.f32.mrb[5].mxu1  ;;  %v1395_v11 = vpop.f32.mrb[6].mxu0 }
  0xe4   :  { %1095 = vst.msk [vmem:[%s2112_s4 + $0xc] sm:$0xf] %vm1091_vm2, %v1292_v3  ;;  %v806_v12 = vsel %vm677_vm8, %v526_v61, %v742_v4  ;;  %vm648_vm11 = vcmp.ge.f32.partialorder %v411_v5, 0.0  ;;  %v713_v13 = vmul.f32 %v1652_v36, %v411_v5  ;;  %v1427_v15 = vpop.f32.mrb[6].mxu1  ;;  %v405_v16 = vpop.f32.mrb[7].mxu0  ;;  %v403_v20 = vadd.f32 %v1647_v34, %v402_v7 }
  0xe5   :  { %v1324_v17 = vpack.c.bf16 %v806_v12, %v806_v12  ;;  %v772_v18 = vsel %vm643_vm9, %v390_v0, %v708_v8  ;;  %v804_v19 = vsel %vm675_vm10, %v518_v1, %v740_v9  ;;  %v533_v21 = vpop.f32.mrb[7].mxu1  ;;  %vm680_vm12 = vcmp.ge.f32.partialorder %v539_v14, 0.0 }
  0xe6   :  { %v1290_v22 = vpack.c.bf16 %v772_v18, %v772_v18  ;;  %v1322_v23 = vpack.c.bf16 %v804_v19, %v804_v19  ;;  %v777_v24 = vsel %vm648_vm11, %v411_v5, %v713_v13  ;;  %v745_v26 = vmul.f32 %v1652_v36, %v539_v14 }
  0xe7   :  { %1127 = vst.msk [vmem:[%s2112_s4 + $0x8c] sm:$0xf] %vm1091_vm2, %v1324_v17  ;;  %v1295_v25 = vpack.c.bf16 %v777_v24, %v777_v24  ;;  %vm646_vm13 = vcmp.ge.f32.partialorder %v403_v20, 0.0  ;;  %v711_v27 = vmul.f32 %v1652_v36, %v403_v20  ;;  %v531_v28 = vadd.f32 %v1647_v34, %v530_v10 }
  0xe8   :  { %1093 = vst.msk [vmem:[%s2112_s4 + $0x4] sm:$0xf] %vm1091_vm2, %v1290_v22  ;;  %1125 = vst.msk [vmem:[%s2112_s4 + $0x84] sm:$0xf] %vm1091_vm2, %v1322_v23  ;;  %v414_v29 = vadd.f32 %v1395_v11, %v1647_v34  ;;  %v542_v30 = vadd.f32 %v1427_v15, %v1647_v34  ;;  %v406_v31 = vadd.f32 %v1647_v34, %v405_v16 }
  0xe9   :  { %1098 = vst.msk [vmem:[%s2112_s4 + $0x18] sm:$0xf] %vm1091_vm2, %v1295_v25  ;;  %v809_v32 = vsel %vm680_vm12, %v539_v14, %v745_v26  ;;  %v775_v33 = vsel %vm646_vm13, %v403_v20, %v711_v27  ;;  %v534_v35 = vadd.f32 %v1647_v34, %v533_v21  ;;  %v1398_v37 = vpop.f32.mrb[8].mxu0  ;;  %vm678_vm14 = vcmp.ge.f32.partialorder %v531_v28, 0.0  ;;  %v1430_v41 = vpop.f32.mrb[8].mxu1 }
  0xea   :  { %v1327_v38 = vpack.c.bf16 %v809_v32, %v809_v32  ;;  %v1293_v39 = vpack.c.bf16 %v775_v33, %v775_v33  ;;  %v743_v40 = vmul.f32 %v1652_v36, %v531_v28  ;;  %v418_v42 = vpop.f32.mrb[9].mxu0  ;;  %vm649_vm15 = vcmp.ge.f32.partialorder %v414_v29, 0.0  ;;  %v546_v45 = vpop.f32.mrb[9].mxu1 }
  0xeb   :  { %v714_v43 = vmul.f32 %v1652_v36, %v414_v29  ;;  %vm681_vm0 = vcmp.ge.f32.partialorder %v542_v30, 0.0  ;;  %v746_v44 = vmul.f32 %v1652_v36, %v542_v30  ;;  %v1399_v46 = vpop.f32.mrb[10].mxu0  ;;  %vm647_vm1 = vcmp.ge.f32.partialorder %v406_v31, 0.0  ;;  %v1431_v49 = vpop.f32.mrb[10].mxu1 }
  0xec   :  { %1130 = vst.msk [vmem:[%s2112_s4 + $0x98] sm:$0xf] %vm1091_vm2, %v1327_v38  ;;  %1096 = vst.msk [vmem:[%s2112_s4 + $0x10] sm:$0xf] %vm1091_vm2, %v1293_v39  ;;  %v807_v47 = vsel %vm678_vm14, %v531_v28, %v743_v40  ;;  %v712_v48 = vmul.f32 %v1652_v36, %v406_v31  ;;  %vm679_vm3 = vcmp.ge.f32.partialorder %v534_v35, 0.0  ;;  %v421_v50 = vpop.f32.mrb[11].mxu0  ;;  %v744_v54 = vmul.f32 %v1652_v36, %v534_v35 }
  0xed   :  { %v1325_v51 = vpack.c.bf16 %v807_v47, %v807_v47  ;;  %v778_v52 = vsel %vm649_vm15, %v414_v29, %v714_v43  ;;  %v810_v53 = vsel %vm681_vm0, %v542_v30, %v746_v44  ;;  %v549_v55 = vpop.f32.mrb[11].mxu1  ;;  %v427_v59 = vadd.f32 %v1398_v37, %v1647_v34 }
  0xee   :  { %v1296_v56 = vpack.c.bf16 %v778_v52, %v778_v52  ;;  %v1328_v57 = vpack.c.bf16 %v810_v53, %v810_v53  ;;  %v776_v58 = vsel %vm647_vm1, %v406_v31, %v712_v48  ;;  %v808_v61 = vsel %vm679_vm3, %v534_v35, %v744_v54 }
  0xef   :  { %1128 = vst.msk [vmem:[%s2112_s4 + $0x90] sm:$0xf] %vm1091_vm2, %v1325_v51  ;;  %v1294_v60 = vpack.c.bf16 %v776_v58, %v776_v58  ;;  %v555_v62 = vadd.f32 %v1430_v41, %v1647_v34  ;;  %v419_v63 = vadd.f32 %v1647_v34, %v418_v42  ;;  %v1326_v0 = vpack.c.bf16 %v808_v61, %v808_v61 }
  0xf0   :  { %1099 = vst.msk [vmem:[%s2112_s4 + $0x1c] sm:$0xf] %vm1091_vm2, %v1296_v56  ;;  %1131 = vst.msk [vmem:[%s2112_s4 + $0x9c] sm:$0xf] %vm1091_vm2, %v1328_v57  ;;  %vm652_vm4 = vcmp.ge.f32.partialorder %v427_v59, 0.0  ;;  %v717_v1 = vmul.f32 %v1652_v36, %v427_v59  ;;  %v547_v2 = vadd.f32 %v1647_v34, %v546_v45  ;;  %v430_v8 = vadd.f32 %v1399_v46, %v1647_v34 }
  0xf1   :  { %1097 = vst.msk [vmem:[%s2112_s4 + $0x14] sm:$0xf] %vm1091_vm2, %v1294_v60  ;;  %vm684_vm5 = vcmp.ge.f32.partialorder %v555_v62, 0.0  ;;  %v749_v3 = vmul.f32 %v1652_v36, %v555_v62  ;;  %vm650_vm6 = vcmp.ge.f32.partialorder %v419_v63, 0.0  ;;  %v715_v4 = vmul.f32 %v1652_v36, %v419_v63  ;;  %v1402_v5 = vpop.f32.mrb[12].mxu0  ;;  %v1434_v9 = vpop.f32.mrb[12].mxu1 }
  0xf2   :  { %1129 = vst.msk [vmem:[%s2112_s4 + $0x94] sm:$0xf] %vm1091_vm2, %v1326_v0  ;;  %v781_v6 = vsel %vm652_vm4, %v427_v59, %v717_v1  ;;  %vm682_vm7 = vcmp.ge.f32.partialorder %v547_v2, 0.0  ;;  %v747_v7 = vmul.f32 %v1652_v36, %v547_v2  ;;  %v434_v10 = vpop.f32.mrb[13].mxu0  ;;  %v558_v14 = vadd.f32 %v1431_v49, %v1647_v34  ;;  %v562_v15 = vpop.f32.mrb[13].mxu1 }
  0xf3   :  { %v1299_v11 = vpack.c.bf16 %v781_v6, %v781_v6  ;;  %v813_v12 = vsel %vm684_vm5, %v555_v62, %v749_v3  ;;  %v779_v13 = vsel %vm650_vm6, %v419_v63, %v715_v4  ;;  %v1403_v16 = vpop.f32.mrb[14].mxu0  ;;  %vm653_vm8 = vcmp.ge.f32.partialorder %v430_v8, 0.0  ;;  %v1435_v20 = vpop.f32.mrb[14].mxu1 }
  0xf4   :  { %v1331_v17 = vpack.c.bf16 %v813_v12, %v813_v12  ;;  %v1297_v18 = vpack.c.bf16 %v779_v13, %v779_v13  ;;  %v811_v19 = vsel %vm682_vm7, %v547_v2, %v747_v7  ;;  %v437_v21 = vpop.f32.mrb[15].mxu0  ;;  %v718_v23 = vmul.f32 %v1652_v36, %v430_v8  ;;  %v565_v25 = vpop.f32.mrb[15].mxu1 }
  0xf5   :  { %1102 = vst.msk [vmem:[%s2112_s4 + $0x28] sm:$0xf] %vm1091_vm2, %v1299_v11  ;;  %v1329_v22 = vpack.c.bf16 %v811_v19, %v811_v19  ;;  %vm685_vm9 = vcmp.ge.f32.partialorder %v558_v14, 0.0  ;;  %v750_v24 = vmul.f32 %v1652_v36, %v558_v14  ;;  %v422_v26 = vadd.f32 %v1647_v34, %v421_v50 }
  0xf6   :  { %1134 = vst.msk [vmem:[%s2112_s4 + $0xa8] sm:$0xf] %vm1091_vm2, %v1331_v17  ;;  %1100 = vst.msk [vmem:[%s2112_s4 + $0x20] sm:$0xf] %vm1091_vm2, %v1297_v18  ;;  %v550_v27 = vadd.f32 %v1647_v34, %v549_v55  ;;  %v443_v28 = vadd.f32 %v1402_v5, %v1647_v34  ;;  %v571_v29 = vadd.f32 %v1434_v9, %v1647_v34 }
  0xf7   :  { %1132 = vst.msk [vmem:[%s2112_s4 + $0xa0] sm:$0xf] %vm1091_vm2, %v1329_v22  ;;  %v782_v30 = vsel %vm653_vm8, %v430_v8, %v718_v23  ;;  %v814_v31 = vsel %vm685_vm9, %v558_v14, %v750_v24  ;;  %v435_v32 = vadd.f32 %v1647_v34, %v434_v10  ;;  %v563_v33 = vadd.f32 %v1647_v34, %v562_v15 }
  0xf8   :  { %v1300_v35 = vpack.c.bf16 %v782_v30, %v782_v30  ;;  %v1332_v37 = vpack.c.bf16 %v814_v31, %v814_v31  ;;  %vm651_vm10 = vcmp.ge.f32.partialorder %v422_v26, 0.0  ;;  %v716_v38 = vmul.f32 %v1652_v36, %v422_v26 }
  0xf9   :  { %vm683_vm11 = vcmp.ge.f32.partialorder %v550_v27, 0.0  ;;  %v748_v39 = vmul.f32 %v1652_v36, %v550_v27  ;;  %vm656_vm12 = vcmp.ge.f32.partialorder %v443_v28, 0.0  ;;  %v721_v40 = vmul.f32 %v1652_v36, %v443_v28  ;;  %v1406_v41 = vpop.f32.mrb[16].mxu0  ;;  %v1438_v44 = vpop.f32.mrb[16].mxu1 }
  0xfa   :  { %1103 = vst.msk [vmem:[%s2112_s4 + $0x2c] sm:$0xf] %vm1091_vm2, %v1300_v35  ;;  %1135 = vst.msk [vmem:[%s2112_s4 + $0xac] sm:$0xf] %vm1091_vm2, %v1332_v37  ;;  %v780_v42 = vsel %vm651_vm10, %v422_v26, %v716_v38  ;;  %vm688_vm13 = vcmp.ge.f32.partialorder %v571_v29, 0.0  ;;  %v753_v43 = vmul.f32 %v1652_v36, %v571_v29  ;;  %vm654_vm14 = vcmp.ge.f32.partialorder %v435_v32, 0.0 }
  0xfb   :  { %v450_v45 = vpop.f32.mrb[17].mxu0  ;;  %v1298_v46 = vpack.c.bf16 %v780_v42, %v780_v42  ;;  %v812_v47 = vsel %vm683_vm11, %v550_v27, %v748_v39  ;;  %v785_v48 = vsel %vm656_vm12, %v443_v28, %v721_v40  ;;  %v719_v49 = vmul.f32 %v1652_v36, %v435_v32  ;;  %v578_v50 = vpop.f32.mrb[17].mxu1 }
  0xfc   :  { %v1798_v51 = vpop.f32.mrb[18].mxu0  ;;  %v1330_v52 = vpack.c.bf16 %v812_v47, %v812_v47  ;;  %v1303_v53 = vpack.c.bf16 %v785_v48, %v785_v48  ;;  %v817_v54 = vsel %vm688_vm13, %v571_v29, %v753_v43  ;;  %vm686_vm15 = vcmp.ge.f32.partialorder %v563_v33, 0.0  ;;  %v1439_v55 = vpop.f32.mrb[18].mxu1 }
  0xfd   :  { %v1800_v56 = vpop.f32.mrb[19].mxu0  ;;  %1101 = vst.msk [vmem:[%s2112_s4 + $0x24] sm:$0xf] %vm1091_vm2, %v1298_v46  ;;  %v1335_v57 = vpack.c.bf16 %v817_v54, %v817_v54  ;;  %v783_v58 = vsel %vm654_vm14, %v435_v32, %v719_v49  ;;  %v751_v59 = vmul.f32 %v1652_v36, %v563_v33  ;;  %v446_v60 = vadd.f32 %v1403_v16, %v1647_v34  ;;  %v1809_v61 = vpop.f32.mrb[19].mxu1 }
  0xfe   :  { %1133 = vst.msk [vmem:[%s2112_s4 + $0xa4] sm:$0xf] %vm1091_vm2, %v1330_v52  ;;  %1106 = vst.msk [vmem:[%s2112_s4 + $0x38] sm:$0xf] %vm1091_vm2, %v1303_v53  ;;  %v1301_v62 = vpack.c.bf16 %v783_v58, %v783_v58  ;;  %v574_v63 = vadd.f32 %v1435_v20, %v1647_v34  ;;  %v438_v0 = vadd.f32 %v1647_v34, %v437_v21 }
  0xff   :  { %v566_v1 = vadd.f32 %v1647_v34, %v565_v25  ;;  %1138 = vst.msk [vmem:[%s2112_s4 + $0xb8] sm:$0xf] %vm1091_vm2, %v1335_v57  ;;  %v815_v2 = vsel %vm686_vm15, %v563_v33, %v751_v59  ;;  %vm657_vm0 = vcmp.ge.f32.partialorder %v446_v60, 0.0  ;;  %v722_v3 = vmul.f32 %v1652_v36, %v446_v60 }
 0x100   :  { %v459_v4 = vadd.f32 %v1406_v41, %v1647_v34  ;;  %1104 = vst.msk [vmem:[%s2112_s4 + $0x30] sm:$0xf] %vm1091_vm2, %v1301_v62  ;;  %v1333_v5 = vpack.c.bf16 %v815_v2, %v815_v2  ;;  %vm689_vm1 = vcmp.ge.f32.partialorder %v574_v63, 0.0  ;;  %v754_v6 = vmul.f32 %v1652_v36, %v574_v63 }
 0x101   :  { %vm655_vm3 = vcmp.ge.f32.partialorder %v438_v0, 0.0  ;;  %v786_v7 = vsel %vm657_vm0, %v446_v60, %v722_v3  ;;  %v720_v8 = vmul.f32 %v1652_v36, %v438_v0  ;;  %vm687_vm4 = vcmp.ge.f32.partialorder %v566_v1, 0.0  ;;  %v1410_v10 = vpop.f32.mrb[20].mxu0  ;;  %v1442_v14 = vpop.f32.mrb[20].mxu1 }
 0x102   :  { %v752_v9 = vmul.f32 %v1652_v36, %v566_v1  ;;  %1136 = vst.msk [vmem:[%s2112_s4 + $0xb0] sm:$0xf] %vm1091_vm2, %v1333_v5  ;;  %v1304_v11 = vpack.c.bf16 %v786_v7, %v786_v7  ;;  %v818_v12 = vsel %vm689_vm1, %v574_v63, %v754_v6  ;;  %vm660_vm5 = vcmp.ge.f32.partialorder %v459_v4, 0.0  ;;  %v466_v15 = vpop.f32.mrb[21].mxu0  ;;  %v1842_v20 = vpop.f32.mrb[21].mxu1 }
 0x103   :  { %v725_v13 = vmul.f32 %v1652_v36, %v459_v4  ;;  %v1336_v16 = vpack.c.bf16 %v818_v12, %v818_v12  ;;  %v784_v17 = vsel %vm655_vm3, %v438_v0, %v720_v8  ;;  %v587_v19 = vadd.f32 %v1438_v44, %v1647_v34  ;;  %v1844_v21 = vpop.f32.mrb[22].mxu0  ;;  %v1851_v26 = vpop.f32.mrb[22].mxu1 }
 0x104   :  { %v816_v18 = vsel %vm687_vm4, %v566_v1, %v752_v9  ;;  %1107 = vst.msk [vmem:[%s2112_s4 + $0x3c] sm:$0xf] %vm1091_vm2, %v1304_v11  ;;  %v1302_v22 = vpack.c.bf16 %v784_v17, %v784_v17  ;;  %v451_v25 = vadd.f32 %v1647_v34, %v450_v45  ;;  %v1853_v27 = vpop.f32.mrb[23].mxu0  ;;  %v579_v30 = vadd.f32 %v1647_v34, %v578_v50  ;;  %v1861_v31 = vpop.f32.mrb[23].mxu1 }
 0x105   :  { %v1334_v23 = vpack.c.bf16 %v816_v18, %v816_v18  ;;  %v789_v24 = vsel %vm660_vm5, %v459_v4, %v725_v13  ;;  %1139 = vst.msk [vmem:[%s2112_s4 + $0xbc] sm:$0xf] %vm1091_vm2, %v1336_v16  ;;  %vm692_vm6 = vcmp.ge.f32.partialorder %v587_v19, 0.0  ;;  %v757_v29 = vmul.f32 %v1652_v36, %v587_v19 }
 0x106   :  { %v1307_v28 = vpack.c.bf16 %v789_v24, %v789_v24  ;;  %1105 = vst.msk [vmem:[%s2112_s4 + $0x34] sm:$0xf] %vm1091_vm2, %v1302_v22  ;;  %vm658_vm7 = vcmp.ge.f32.partialorder %v451_v25, 0.0  ;;  %v723_v32 = vmul.f32 %v1652_v36, %v451_v25  ;;  %v462_v33 = vadd.f32 %v1798_v51, %v1647_v34 }
 0x107   :  { %1137 = vst.msk [vmem:[%s2112_s4 + $0xb4] sm:$0xf] %vm1091_vm2, %v1334_v23  ;;  %v590_v35 = vadd.f32 %v1439_v55, %v1647_v34  ;;  %v821_v37 = vsel %vm692_vm6, %v587_v19, %v757_v29  ;;  %vm690_vm8 = vcmp.ge.f32.partialorder %v579_v30, 0.0  ;;  %v755_v38 = vmul.f32 %v1652_v36, %v579_v30 }
 0x108   :  { %1110 = vst.msk [vmem:[%s2112_s4 + $0x48] sm:$0xf] %vm1091_vm2, %v1307_v28  ;;  %v454_v39 = vadd.f32 %v1647_v34, %v1800_v56  ;;  %v1339_v40 = vpack.c.bf16 %v821_v37, %v821_v37  ;;  %v787_v41 = vsel %vm658_vm7, %v451_v25, %v723_v32  ;;  %vm661_vm9 = vcmp.ge.f32.partialorder %v462_v33, 0.0 }
 0x109   :  { %v726_v42 = vmul.f32 %v1652_v36, %v462_v33  ;;  %v1305_v43 = vpack.c.bf16 %v787_v41, %v787_v41  ;;  %v819_v44 = vsel %vm690_vm8, %v579_v30, %v755_v38  ;;  %vm693_vm10 = vcmp.ge.f32.partialorder %v590_v35, 0.0  ;;  %v1884_v46 = vpop.f32.mrb[24].mxu0  ;;  %v1446_v50 = vpop.f32.mrb[24].mxu1 }
 0x10a   :  { %v758_v45 = vmul.f32 %v1652_v36, %v590_v35  ;;  %1142 = vst.msk [vmem:[%s2112_s4 + $0xc8] sm:$0xf] %vm1091_vm2, %v1339_v40  ;;  %v1337_v47 = vpack.c.bf16 %v819_v44, %v819_v44  ;;  %vm659_vm11 = vcmp.ge.f32.partialorder %v454_v39, 0.0  ;;  %v724_v49 = vmul.f32 %v1652_v36, %v454_v39  ;;  %v1891_v51 = vpop.f32.mrb[25].mxu0  ;;  %v1900_v56 = vpop.f32.mrb[25].mxu1 }
 0x10b   :  { %v790_v48 = vsel %vm661_vm9, %v462_v33, %v726_v42  ;;  %1108 = vst.msk [vmem:[%s2112_s4 + $0x40] sm:$0xf] %vm1091_vm2, %v1305_v43  ;;  %v582_v54 = vadd.f32 %v1647_v34, %v1809_v61  ;;  %v475_v55 = vadd.f32 %v1410_v10, %v1647_v34  ;;  %v1902_v57 = vpop.f32.mrb[26].mxu0  ;;  %v603_v60 = vadd.f32 %v1442_v14, %v1647_v34  ;;  %v1910_v63 = vpop.f32.mrb[26].mxu1 }
 0x10c   :  { %v1308_v52 = vpack.c.bf16 %v790_v48, %v790_v48  ;;  %v822_v53 = vsel %vm693_vm10, %v590_v35, %v758_v45  ;;  %1140 = vst.msk [vmem:[%s2112_s4 + $0xc0] sm:$0xf] %vm1091_vm2, %v1337_v47  ;;  %v788_v59 = vsel %vm659_vm11, %v454_v39, %v724_v49  ;;  %v467_v62 = vadd.f32 %v1647_v34, %v466_v15  ;;  %v1912_v61 = vpop.f32.mrb[27].mxu0  ;;  %v1919_v2 = vpop.f32.mrb[27].mxu1 }
 0x10d   :  { %v1340_v58 = vpack.c.bf16 %v822_v53, %v822_v53  ;;  %v1306_v0 = vpack.c.bf16 %v788_v59, %v788_v59  ;;  %vm691_vm12 = vcmp.ge.f32.partialorder %v582_v54, 0.0  ;;  %v756_v1 = vmul.f32 %v1652_v36, %v582_v54 }
 0x10e   :  { %1111 = vst.msk [vmem:[%s2112_s4 + $0x4c] sm:$0xf] %vm1091_vm2, %v1308_v52  ;;  %vm664_vm13 = vcmp.ge.f32.partialorder %v475_v55, 0.0  ;;  %v729_v3 = vmul.f32 %v1652_v36, %v475_v55  ;;  %vm696_vm14 = vcmp.ge.f32.partialorder %v603_v60, 0.0  ;;  %v761_v4 = vmul.f32 %v1652_v36, %v603_v60 }
 0x10f   :  { %1143 = vst.msk [vmem:[%s2112_s4 + $0xcc] sm:$0xf] %vm1091_vm2, %v1340_v58  ;;  %vm662_vm15 = vcmp.ge.f32.partialorder %v467_v62, 0.0  ;;  %1109 = vst.msk [vmem:[%s2112_s4 + $0x44] sm:$0xf] %vm1091_vm2, %v1306_v0  ;;  %v820_v5 = vsel %vm691_vm12, %v582_v54, %v756_v1  ;;  %v727_v6 = vmul.f32 %v1652_v36, %v467_v62  ;;  %v595_v7 = vadd.f32 %v1647_v34, %v1842_v20 }
 0x110   :  { %v478_v8 = vadd.f32 %v1844_v21, %v1647_v34  ;;  %v1338_v9 = vpack.c.bf16 %v820_v5, %v820_v5  ;;  %v793_v10 = vsel %vm664_vm13, %v475_v55, %v729_v3  ;;  %v825_v11 = vsel %vm696_vm14, %v603_v60, %v761_v4 }
 0x111   :  { %v606_v12 = vadd.f32 %v1851_v26, %v1647_v34  ;;  %v1311_v13 = vpack.c.bf16 %v793_v10, %v793_v10  ;;  %v1343_v14 = vpack.c.bf16 %v825_v11, %v825_v11  ;;  %v791_v15 = vsel %vm662_vm15, %v467_v62, %v727_v6  ;;  %v1418_v16 = vpop.f32.mrb[28].mxu0  ;;  %v1944_v20 = vpop.f32.mrb[28].mxu1 }
 0x112   :  { %vm694_vm0 = vcmp.ge.f32.partialorder %v595_v7, 0.0  ;;  %1141 = vst.msk [vmem:[%s2112_s4 + $0xc4] sm:$0xf] %vm1091_vm2, %v1338_v9  ;;  %v1309_v17 = vpack.c.bf16 %v791_v15, %v791_v15  ;;  %v759_v18 = vmul.f32 %v1652_v36, %v595_v7  ;;  %vm665_vm1 = vcmp.ge.f32.partialorder %v478_v8, 0.0  ;;  %v1946_v21 = vpop.f32.mrb[29].mxu0  ;;  %v1961_v25 = vpop.f32.mrb[29].mxu1 }
 0x113   :  { %v730_v19 = vmul.f32 %v1652_v36, %v478_v8  ;;  %1114 = vst.msk [vmem:[%s2112_s4 + $0x58] sm:$0xf] %vm1091_vm2, %v1311_v13  ;;  %1146 = vst.msk [vmem:[%s2112_s4 + $0xd8] sm:$0xf] %vm1091_vm2, %v1343_v14  ;;  %vm697_vm3 = vcmp.ge.f32.partialorder %v606_v12, 0.0  ;;  %v762_v22 = vmul.f32 %v1652_v36, %v606_v12  ;;  %v470_v23 = vadd.f32 %v1647_v34, %v1853_v27  ;;  %v1963_v26 = vpop.f32.mrb[30].mxu0 }
 0x114   :  { %v598_v24 = vadd.f32 %v1647_v34, %v1861_v31  ;;  %1112 = vst.msk [vmem:[%s2112_s4 + $0x50] sm:$0xf] %vm1091_vm2, %v1309_v17  ;;  %v823_v28 = vsel %vm694_vm0, %v595_v7, %v759_v18  ;;  %v491_v30 = vadd.f32 %v1884_v46, %v1647_v34  ;;  %v619_v27 = vadd.f32 %v1446_v50, %v1647_v34  ;;  %v1973_v32 = vpop.f32.mrb[30].mxu1  ;;  %v1975_v31 = vpop.f32.mrb[31].mxu0 }
 0x115   :  { %v794_v29 = vsel %vm665_vm1, %v478_v8, %v730_v19  ;;  %v1341_v33 = vpack.c.bf16 %v823_v28, %v823_v28  ;;  %v826_v37 = vsel %vm697_vm3, %v606_v12, %v762_v22  ;;  %vm663_vm4 = vcmp.ge.f32.partialorder %v470_v23, 0.0  ;;  %v1977_v38 = vpop.f32.mrb[31].mxu1 }
 0x116   :  { %v1312_v35 = vpack.c.bf16 %v794_v29, %v794_v29  ;;  %v1344_v39 = vpack.c.bf16 %v826_v37, %v826_v37  ;;  %v728_v40 = vmul.f32 %v1652_v36, %v470_v23  ;;  %vm695_vm5 = vcmp.ge.f32.partialorder %v598_v24, 0.0 }
 0x117   :  { %v760_v41 = vmul.f32 %v1652_v36, %v598_v24  ;;  %1144 = vst.msk [vmem:[%s2112_s4 + $0xd0] sm:$0xf] %vm1091_vm2, %v1341_v33  ;;  %vm668_vm6 = vcmp.ge.f32.partialorder %v491_v30, 0.0  ;;  %v733_v42 = vmul.f32 %v1652_v36, %v491_v30  ;;  %vm700_vm7 = vcmp.ge.f32.partialorder %v619_v27, 0.0 }
 0x118   :  { %1115 = vst.msk [vmem:[%s2112_s4 + $0x5c] sm:$0xf] %vm1091_vm2, %v1312_v35  ;;  %v765_v43 = vmul.f32 %v1652_v36, %v619_v27  ;;  %1147 = vst.msk [vmem:[%s2112_s4 + $0xdc] sm:$0xf] %vm1091_vm2, %v1344_v39  ;;  %v792_v44 = vsel %vm663_vm4, %v470_v23, %v728_v40  ;;  %v483_v46 = vadd.f32 %v1647_v34, %v1891_v51 }
 0x119   :  { %v824_v45 = vsel %vm695_vm5, %v598_v24, %v760_v41  ;;  %v611_v47 = vadd.f32 %v1647_v34, %v1900_v56  ;;  %v1310_v48 = vpack.c.bf16 %v792_v44, %v792_v44  ;;  %v797_v50 = vsel %vm668_vm6, %v491_v30, %v733_v42 }
 0x11a   :  { %v1342_v49 = vpack.c.bf16 %v824_v45, %v824_v45  ;;  %v829_v52 = vsel %vm700_vm7, %v619_v27, %v765_v43  ;;  %v1315_v53 = vpack.c.bf16 %v797_v50, %v797_v50  ;;  %vm666_vm8 = vcmp.ge.f32.partialorder %v483_v46, 0.0 }
 0x11b   :  { %v1347_v54 = vpack.c.bf16 %v829_v52, %v829_v52  ;;  %v731_v55 = vmul.f32 %v1652_v36, %v483_v46  ;;  %1113 = vst.msk [vmem:[%s2112_s4 + $0x54] sm:$0xf] %vm1091_vm2, %v1310_v48  ;;  %vm698_vm9 = vcmp.ge.f32.partialorder %v611_v47, 0.0  ;;  %v763_v51 = vmul.f32 %v1652_v36, %v611_v47 }
 0x11c   :  { %1145 = vst.msk [vmem:[%s2112_s4 + $0xd4] sm:$0xf] %vm1091_vm2, %v1342_v49  ;;  %v494_v56 = vadd.f32 %v1902_v57, %v1647_v34  ;;  %v622_v58 = vadd.f32 %v1910_v63, %v1647_v34  ;;  %1118 = vst.msk [vmem:[%s2112_s4 + $0x68] sm:$0xf] %vm1091_vm2, %v1315_v53  ;;  %v486_v60 = vadd.f32 %v1647_v34, %v1912_v61 }
 0x11d   :  { %1150 = vst.msk [vmem:[%s2112_s4 + $0xe8] sm:$0xf] %vm1091_vm2, %v1347_v54  ;;  %v795_v59 = vsel %vm666_vm8, %v483_v46, %v731_v55  ;;  %v614_v57 = vadd.f32 %v1647_v34, %v1919_v2  ;;  %v507_v62 = vadd.f32 %v1418_v16, %v1647_v34  ;;  %v827_v0 = vsel %vm698_vm9, %v611_v47, %v763_v51 }
 0x11e   :  { %v1313_v63 = vpack.c.bf16 %v795_v59, %v795_v59  ;;  %vm669_vm10 = vcmp.ge.f32.partialorder %v494_v56, 0.0  ;;  %v734_v1 = vmul.f32 %v1652_v36, %v494_v56  ;;  %v1345_v3 = vpack.c.bf16 %v827_v0, %v827_v0 }
 0x11f   :  { %vm701_vm11 = vcmp.ge.f32.partialorder %v622_v58, 0.0  ;;  %v766_v4 = vmul.f32 %v1652_v36, %v622_v58  ;;  %vm667_vm12 = vcmp.ge.f32.partialorder %v486_v60, 0.0  ;;  %v732_v2 = vmul.f32 %v1652_v36, %v486_v60 }
 0x120   :  { %1116 = vst.msk [vmem:[%s2112_s4 + $0x60] sm:$0xf] %vm1091_vm2, %v1313_v63  ;;  %v798_v61 = vsel %vm669_vm10, %v494_v56, %v734_v1  ;;  %vm699_vm13 = vcmp.ge.f32.partialorder %v614_v57, 0.0  ;;  %v764_v5 = vmul.f32 %v1652_v36, %v614_v57  ;;  %1148 = vst.msk [vmem:[%s2112_s4 + $0xe0] sm:$0xf] %vm1091_vm2, %v1345_v3  ;;  %vm672_vm14 = vcmp.ge.f32.partialorder %v507_v62, 0.0 }
 0x121   :  { %v1316_v6 = vpack.c.bf16 %v798_v61, %v798_v61  ;;  %v830_v7 = vsel %vm701_vm11, %v622_v58, %v766_v4  ;;  %v737_v8 = vmul.f32 %v1652_v36, %v507_v62  ;;  %v796_v10 = vsel %vm667_vm12, %v486_v60, %v732_v2 }
 0x122   :  { %v1348_v9 = vpack.c.bf16 %v830_v7, %v830_v7  ;;  %v828_v11 = vsel %vm699_vm13, %v614_v57, %v764_v5  ;;  %v635_v12 = vadd.f32 %v1944_v20, %v1647_v34  ;;  %v1314_v13 = vpack.c.bf16 %v796_v10, %v796_v10 }
 0x123   :  { %1119 = vst.msk [vmem:[%s2112_s4 + $0x6c] sm:$0xf] %vm1091_vm2, %v1316_v6  ;;  %v1346_v14 = vpack.c.bf16 %v828_v11, %v828_v11  ;;  %v801_v15 = vsel %vm672_vm14, %v507_v62, %v737_v8  ;;  %v499_v16 = vadd.f32 %v1647_v34, %v1946_v21  ;;  %v627_v19 = vadd.f32 %v1647_v34, %v1961_v25 }
 0x124   :  { %1151 = vst.msk [vmem:[%s2112_s4 + $0xec] sm:$0xf] %vm1091_vm2, %v1348_v9  ;;  %v1319_v17 = vpack.c.bf16 %v801_v15, %v801_v15  ;;  %vm704_vm15 = vcmp.ge.f32.partialorder %v635_v12, 0.0  ;;  %v769_v18 = vmul.f32 %v1652_v36, %v635_v12  ;;  %1117 = vst.msk [vmem:[%s2112_s4 + $0x64] sm:$0xf] %vm1091_vm2, %v1314_v13  ;;  %v510_v21 = vadd.f32 %v1963_v26, %v1647_v34 }
 0x125   :  { %1149 = vst.msk [vmem:[%s2112_s4 + $0xe4] sm:$0xf] %vm1091_vm2, %v1346_v14  ;;  %vm670_vm0 = vcmp.ge.f32.partialorder %v499_v16, 0.0  ;;  %v735_v20 = vmul.f32 %v1652_v36, %v499_v16  ;;  %v638_v22 = vadd.f32 %v1973_v32, %v1647_v34  ;;  %vm702_vm1 = vcmp.ge.f32.partialorder %v627_v19, 0.0 }
 0x126   :  { %1122 = vst.msk [vmem:[%s2112_s4 + $0x78] sm:$0xf] %vm1091_vm2, %v1319_v17  ;;  %v833_v23 = vsel %vm704_vm15, %v635_v12, %v769_v18  ;;  %v767_v24 = vmul.f32 %v1652_v36, %v627_v19  ;;  %v502_v25 = vadd.f32 %v1647_v34, %v1975_v31  ;;  %vm673_vm3 = vcmp.ge.f32.partialorder %v510_v21, 0.0 }
 0x127   :  { %v1351_v28 = vpack.c.bf16 %v833_v23, %v833_v23  ;;  %v799_v29 = vsel %vm670_vm0, %v499_v16, %v735_v20  ;;  %v738_v26 = vmul.f32 %v1652_v36, %v510_v21  ;;  %vm705_vm4 = vcmp.ge.f32.partialorder %v638_v22, 0.0 }
 0x128   :  { %v1317_v30 = vpack.c.bf16 %v799_v29, %v799_v29  ;;  %v831_v27 = vsel %vm702_vm1, %v627_v19, %v767_v24  ;;  %v770_v32 = vmul.f32 %v1652_v36, %v638_v22  ;;  %vm671_vm5 = vcmp.ge.f32.partialorder %v502_v25, 0.0 }
 0x129   :  { %1154 = vst.msk [vmem:[%s2112_s4 + $0xf8] sm:$0xf] %vm1091_vm2, %v1351_v28  ;;  %v1349_v33 = vpack.c.bf16 %v831_v27, %v831_v27  ;;  %v802_v35 = vsel %vm673_vm3, %v510_v21, %v738_v26  ;;  %v736_v31 = vmul.f32 %v1652_v36, %v502_v25  ;;  %v630_v40 = vadd.f32 %v1647_v34, %v1977_v38 }
 0x12a   :  { %1120 = vst.msk [vmem:[%s2112_s4 + $0x70] sm:$0xf] %vm1091_vm2, %v1317_v30  ;;  %v1320_v37 = vpack.c.bf16 %v802_v35, %v802_v35  ;;  %v834_v39 = vsel %vm705_vm4, %v638_v22, %v770_v32 }
 0x12b   :  { %1152 = vst.msk [vmem:[%s2112_s4 + $0xf0] sm:$0xf] %vm1091_vm2, %v1349_v33  ;;  %v1352_v41 = vpack.c.bf16 %v834_v39, %v834_v39  ;;  %v800_v42 = vsel %vm671_vm5, %v502_v25, %v736_v31  ;;  %vm703_vm6 = vcmp.ge.f32.partialorder %v630_v40, 0.0  ;;  %v768_v44 = vmul.f32 %v1652_v36, %v630_v40 }
 0x12c   :  { %1123 = vst.msk [vmem:[%s2112_s4 + $0x7c] sm:$0xf] %vm1091_vm2, %v1320_v37  ;;  %v1318_v43 = vpack.c.bf16 %v800_v42, %v800_v42 }
 0x12d   :  { %1155 = vst.msk [vmem:[%s2112_s4 + $0xfc] sm:$0xf] %vm1091_vm2, %v1352_v41  ;;  %v832_v34 = vsel %vm703_vm6, %v630_v40, %v768_v44 }
 0x12e   :  { %1121 = vst.msk [vmem:[%s2112_s4 + $0x74] sm:$0xf] %vm1091_vm2, %v1318_v43  ;;  %v1350_v38 = vpack.c.bf16 %v832_v34, %v832_v34 }
 0x130   :  { %1153 = vst.msk [vmem:[%s2112_s4 + $0xf4] sm:$0xf] %vm1091_vm2, %v1350_v38 }

</bundles_post_ra>
